<compile_context>
chip_gen: v7x
topology: tpu7x:2x2x1
jax: 0.10.0
libtpu: 0.0.40
codegen_flags: <defaults>
</compile_context>

<pallas_src>
import functools
import math

import jax
import jax.numpy as jnp
from jax import lax
from jax.experimental import pallas as pl
from jax.experimental.pallas import tpu as pltpu


_MXU_MIN_C = 16   # switch the 1x1 attention contraction onto the MXU at this C
_MXU_MIN_F = 32


def _ksigmoid(z):
    # sigmoid(z) = 0.5 * (tanh(z/2) + 1): single EUP push per vreg, exact.
    return jnp.tanh(z * 0.5) * 0.5 + 0.5


def _fused_kernel(x_ref, m_ref, w3_ref, w1_ref, wa_ref, o_ref, *, H, W, C, use_mxu):
    """TB batch elements per grid step; x is read from HBM exactly once.

    x_ref : (TB, C, HW) VMEM  input features, HW = H*W in the lane dim
    m_ref : (4, HW)     VMEM  precomputed conv boundary masks (resident)
    w3_ref: (9,)        SMEM  3x3 spatial conv weights, row-major
    w1_ref: (1,)        SMEM  1x1 spatial conv weight (scalar)
    wa_ref: (F, C)      VMEM  attention 1x1 conv weight (resident)
    o_ref : (TB, F, HW) VMEM  output (lane-dense)
    """
    HW = H * W
    x = x_ref[...]                                   # (TB, C, HW) f32

    # ---- channel mean: cross-sublane reduce (XLU slot, VALU stays free) -----
    g = jnp.sum(x, axis=1) * (1.0 / C)               # (TB, HW)

    # ---- 3x3 'SAME' zero-padded cross-correlation via lane rolls ------------
    # Boundary masks are grid-invariant; they arrive precomputed and stay
    # resident in VMEM (same block index every step -> no re-DMA, no per-step
    # iota/mod/div/compares on the VALU).
    mxm = m_ref[0:1, :]      # column-1 in range
    mxp = m_ref[1:2, :]      # column+1 in range
    mym = m_ref[2:3, :]      # row-1    in range
    myp = m_ref[3:4, :]      # row+1    in range

    def sh(v, k):
        # sh(v, k)[..., p] = v[..., (p + k) mod HW]; wrapped entries are masked.
        return pltpu.roll(v, shift=(-k) % HW, axis=1) if k else v

    g_m = sh(g, -1) * mxm
    g_0 = g
    g_p = sh(g, 1) * mxp

    conv = jnp.zeros_like(g)
    for i, dy in enumerate((-1, 0, 1)):
        row = (w3_ref[3 * i + 0] * g_m
               + w3_ref[3 * i + 1] * g_0
               + w3_ref[3 * i + 2] * g_p)
        row = sh(row, dy * W)
        if dy == -1:
            row = row * mym
        elif dy == 1:
            row = row * myp
        conv = conv + row

    # spatial_wise tail: ReLU -> 1x1 conv (scalar mul) -> Sigmoid
    s = _ksigmoid(jnp.maximum(conv, 0.0) * w1_ref[0])          # (TB, HW)

    # ---- attention_wise: sigmoid(Wa @ (x + s)) -------------------------------
    y = x + s[:, None, :]                                       # (TB, C, HW)
    wa = wa_ref[...]                                            # (F, C)
    if use_mxu:
        # Realistic C/F: contraction on the MXU (f32 accumulate, full precision).
        acc = jnp.einsum('fc,bcl->bfl', wa, y,
                         preferred_element_type=jnp.float32,
                         precision=lax.Precision.HIGHEST)
    else:
        # Tiny C (test shapes): C broadcast FMAs on the VPU, exact f32.
        acc = wa[None, :, 0:1] * y[:, 0:1, :]                   # (TB, F, HW)
        for c in range(1, C):
            acc = acc + wa[None, :, c:c + 1] * y[:, c:c + 1, :]
    o_ref[...] = _ksigmoid(acc).astype(o_ref.dtype)


def _pick_batch_tile(B, C, F, HW):
    """Batch elements per grid step, bounded by a conservative VMEM budget."""
    bytes_per_b = (C + F) * HW * 4
    # double-buffered in+out blocks kept within ~8 MiB (safe under the 32 MiB
    # scoped default and well clear of v7x's 64 MiB physical VMEM)
    tb = max(1, min(B, 256, (8 * 1024 * 1024) // (2 * bytes_per_b)))
    if B > 1:
        # keep >= 2 grid steps so dimension_semantics=('parallel',) can shard
        # the batch axis across both TensorCores on v7x megacore
        tb = min(tb, pl.cdiv(B, 2))
    return tb


def scale_spatial_attention(x_nchw, w3_full, w1_full, wa_full):
    """Pallas TPU implementation of ScaleSpatialAttention.forward.

    x_nchw : (B, C, H, W) float32  (PyTorch layout)
    w3_full: (1, 1, 3, 3)          spatial_wise[0] weight  (bias=False)
    w1_full: (1, 1, 1, 1)          spatial_wise[2] weight  (bias=False)
    wa_full: (F, C, 1, 1)          attention_wise[0] weight (bias=False)
    returns  (B, F, H, W) float32
    """
    B, C, H, W = x_nchw.shape
    F = wa_full.shape[0]
    HW = H * W

    # Free reshapes only (contiguous); no HBM transpose passes.
    x = x_nchw.reshape(B, C, HW).astype(jnp.float32)
    w3 = w3_full.reshape(9).astype(jnp.float32)
    w1 = w1_full.reshape(1).astype(jnp.float32)
    wa = wa_full.reshape(F, C).astype(jnp.float32)

    # Grid-invariant 3x3-conv boundary masks, computed once on the host side.
    pos = jnp.arange(HW, dtype=jnp.int32)
    wi = pos % W
    hi = pos // W
    masks = jnp.stack([wi >= 1, wi <= W - 2, hi >= 1, hi <= H - 2]).astype(jnp.float32)

    tb = _pick_batch_tile(B, C, F, HW)
    grid_b = pl.cdiv(B, tb)
    use_mxu = (C >= _MXU_MIN_C) or (F >= _MXU_MIN_F)

    kernel = functools.partial(_fused_kernel, H=H, W=W, C=C, use_mxu=use_mxu)

    out = pl.pallas_call(
        kernel,
        out_shape=jax.ShapeDtypeStruct((B, F, HW), jnp.float32),
        grid=(grid_b,),
        in_specs=[
            pl.BlockSpec((tb, C, HW), lambda b: (b, 0, 0)),
            pl.BlockSpec((4, HW), lambda b: (0, 0)),          # resident masks
            pl.BlockSpec(memory_space=pltpu.MemorySpace.SMEM),
            pl.BlockSpec(memory_space=pltpu.MemorySpace.SMEM),
            pl.BlockSpec((F, C), lambda b: (0, 0)),           # resident weights
        ],
        out_specs=pl.BlockSpec((tb, F, HW), lambda b: (b, 0, 0)),
        compiler_params=pltpu.CompilerParams(
            dimension_semantics=("parallel",)),
    )(x, masks, w3, w1, wa)

    return out.reshape(B, F, H, W)


# ------------------------------ reference -----------------------------------

def _reference(x_nchw, w3_full, w1_full, wa_full):
    g = jnp.mean(x_nchw, axis=1, keepdims=True)
    c = lax.conv_general_dilated(g, w3_full, (1, 1), 'SAME',
                                 dimension_numbers=('NCHW', 'OIHW', 'NCHW'),
                                 precision=lax.Precision.HIGHEST)
    s = jax.nn.sigmoid(jnp.maximum(c, 0.0) * w1_full.reshape(()))
    y = s + x_nchw
    F = wa_full.shape[0]
    out = jnp.einsum('fc,bchw->bfhw', wa_full.reshape(F, -1), y,
                     precision=lax.Precision.HIGHEST)
    return jax.nn.sigmoid(out)


# --------------------------------- main --------------------------------------

if __name__ == "__main__":
    B, C, H, W, F = 2, 4, 16, 16, 8   # in_planes=4, num_features=8

    key = jax.random.PRNGKey(0)
    kx, k3, k1, ka = jax.random.split(key, 4)

    x = jax.random.normal(kx, (B, C, H, W), jnp.float32)

    # Deterministic kaiming_normal_(mode='fan_out', nonlinearity='relu'):
    #   std = sqrt(2 / (out_channels * kH * kW))
    w3_full = jax.random.normal(k3, (1, 1, 3, 3), jnp.float32) * math.sqrt(2.0 / (1 * 3 * 3))
    w1_full = jax.random.normal(k1, (1, 1, 1, 1), jnp.float32) * math.sqrt(2.0 / (1 * 1 * 1))
    wa_full = jax.random.normal(ka, (F, C, 1, 1), jnp.float32) * math.sqrt(2.0 / (F * 1 * 1))

    out = scale_spatial_attention(x, w3_full, w1_full, wa_full)
    out = jax.block_until_ready(out)

    ref = _reference(x, w3_full, w1_full, wa_full)
    assert out.shape == (B, F, H, W), out.shape
    err = float(jnp.max(jnp.abs(out - ref)))
    assert bool(jnp.allclose(out, ref, atol=2e-3, rtol=2e-3)), err

    print("KERNEL_OK")
</pallas_src>

<mosaic_0001>
module attributes {stable_mosaic.version = 11 : i64} {
  func.func @_fused_kernel(%arg0: i32, %arg1: memref<1x4x256xf32, #tpu.memory_space<vmem>>, %arg2: memref<4x256xf32, #tpu.memory_space<vmem>>, %arg3: memref<9xf32, #tpu.memory_space<smem>>, %arg4: memref<1xf32, #tpu.memory_space<smem>>, %arg5: memref<8x4xf32, #tpu.memory_space<vmem>>, %arg6: memref<1x8x256xf32, #tpu.memory_space<vmem>>) attributes {dimension_semantics = [#tpu.dimension_semantics<parallel>], iteration_bounds = array<i64: 2>, scalar_prefetch = 0 : i64, scratch_operands = 0 : i64, tpu.core_type = #tpu.core_type<tc>, window_params = [{transform_indices = @transform_0, window_bounds = array<i64: 1, 4, 256>}, {pipeline_mode = #tpu.pipeline_mode<synchronous>, transform_indices = @transform_1, window_bounds = array<i64: 4, 256>}, {transform_indices = @transform_2, window_bounds = array<i64: 9>}, {transform_indices = @transform_3, window_bounds = array<i64: 1>}, {pipeline_mode = #tpu.pipeline_mode<synchronous>, transform_indices = @transform_4, window_bounds = array<i64: 8, 4>}, {transform_indices = @transform_5, window_bounds = array<i64: 1, 8, 256>}]} {
    %c0 = arith.constant 0 : index
    %c0_0 = arith.constant 0 : index
    %c0_1 = arith.constant 0 : index
    %0 = vector.load %arg1[%c0, %c0_0, %c0_1] : memref<1x4x256xf32, #tpu.memory_space<vmem>>, vector<1x4x256xf32>
    %cst = arith.constant dense<0.000000e+00> : vector<1x256xf32>
    %1 = vector.multi_reduction <add>, %0, %cst [1] : vector<1x4x256xf32> to vector<1x256xf32>
    %cst_2 = arith.constant 2.500000e-01 : f32
    %2 = vector.broadcast %cst_2 : f32 to vector<1x256xf32>
    %3 = arith.mulf %1, %2 : vector<1x256xf32>
    %c0_3 = arith.constant 0 : index
    %c0_4 = arith.constant 0 : index
    %4 = vector.load %arg2[%c0_3, %c0_4] : memref<4x256xf32, #tpu.memory_space<vmem>>, vector<1x256xf32>
    %c1 = arith.constant 1 : index
    %c0_5 = arith.constant 0 : index
    %5 = vector.load %arg2[%c1, %c0_5] : memref<4x256xf32, #tpu.memory_space<vmem>>, vector<1x256xf32>
    %c2 = arith.constant 2 : index
    %c0_6 = arith.constant 0 : index
    %6 = vector.load %arg2[%c2, %c0_6] : memref<4x256xf32, #tpu.memory_space<vmem>>, vector<1x256xf32>
    %c3 = arith.constant 3 : index
    %c0_7 = arith.constant 0 : index
    %7 = vector.load %arg2[%c3, %c0_7] : memref<4x256xf32, #tpu.memory_space<vmem>>, vector<1x256xf32>
    %c1_i32 = arith.constant 1 : i32
    %8 = tpu.dynamic_rotate %3 by %c1_i32 dim 1 : vector<1x256xf32>, i32 -> vector<1x256xf32>
    %9 = arith.mulf %8, %4 : vector<1x256xf32>
    %c255_i32 = arith.constant 255 : i32
    %10 = tpu.dynamic_rotate %3 by %c255_i32 dim 1 : vector<1x256xf32>, i32 -> vector<1x256xf32>
    %11 = arith.mulf %10, %5 : vector<1x256xf32>
    %cst_8 = arith.constant 0.000000e+00 : f32
    %12 = vector.broadcast %cst_8 : f32 to vector<1x256xf32>
    %c0_9 = arith.constant 0 : index
    %13 = memref.load %arg3[%c0_9] : memref<9xf32, #tpu.memory_space<smem>>
    %14 = vector.broadcast %13 : f32 to vector<1x256xf32>
    %15 = arith.mulf %14, %9 : vector<1x256xf32>
    %c1_10 = arith.constant 1 : index
    %16 = memref.load %arg3[%c1_10] : memref<9xf32, #tpu.memory_space<smem>>
    %17 = vector.broadcast %16 : f32 to vector<1x256xf32>
    %18 = arith.mulf %17, %3 : vector<1x256xf32>
    %19 = arith.addf %15, %18 : vector<1x256xf32>
    %c2_11 = arith.constant 2 : index
    %20 = memref.load %arg3[%c2_11] : memref<9xf32, #tpu.memory_space<smem>>
    %21 = vector.broadcast %20 : f32 to vector<1x256xf32>
    %22 = arith.mulf %21, %11 : vector<1x256xf32>
    %23 = arith.addf %19, %22 : vector<1x256xf32>
    %c16_i32 = arith.constant 16 : i32
    %24 = tpu.dynamic_rotate %23 by %c16_i32 dim 1 : vector<1x256xf32>, i32 -> vector<1x256xf32>
    %25 = arith.mulf %24, %6 : vector<1x256xf32>
    %26 = arith.addf %12, %25 : vector<1x256xf32>
    %c3_12 = arith.constant 3 : index
    %27 = memref.load %arg3[%c3_12] : memref<9xf32, #tpu.memory_space<smem>>
    %28 = vector.broadcast %27 : f32 to vector<1x256xf32>
    %29 = arith.mulf %28, %9 : vector<1x256xf32>
    %c4 = arith.constant 4 : index
    %30 = memref.load %arg3[%c4] : memref<9xf32, #tpu.memory_space<smem>>
    %31 = vector.broadcast %30 : f32 to vector<1x256xf32>
    %32 = arith.mulf %31, %3 : vector<1x256xf32>
    %33 = arith.addf %29, %32 : vector<1x256xf32>
    %c5 = arith.constant 5 : index
    %34 = memref.load %arg3[%c5] : memref<9xf32, #tpu.memory_space<smem>>
    %35 = vector.broadcast %34 : f32 to vector<1x256xf32>
    %36 = arith.mulf %35, %11 : vector<1x256xf32>
    %37 = arith.addf %33, %36 : vector<1x256xf32>
    %38 = arith.addf %26, %37 : vector<1x256xf32>
    %c6 = arith.constant 6 : index
    %39 = memref.load %arg3[%c6] : memref<9xf32, #tpu.memory_space<smem>>
    %40 = vector.broadcast %39 : f32 to vector<1x256xf32>
    %41 = arith.mulf %40, %9 : vector<1x256xf32>
    %c7 = arith.constant 7 : index
    %42 = memref.load %arg3[%c7] : memref<9xf32, #tpu.memory_space<smem>>
    %43 = vector.broadcast %42 : f32 to vector<1x256xf32>
    %44 = arith.mulf %43, %3 : vector<1x256xf32>
    %45 = arith.addf %41, %44 : vector<1x256xf32>
    %c8 = arith.constant 8 : index
    %46 = memref.load %arg3[%c8] : memref<9xf32, #tpu.memory_space<smem>>
    %47 = vector.broadcast %46 : f32 to vector<1x256xf32>
    %48 = arith.mulf %47, %11 : vector<1x256xf32>
    %49 = arith.addf %45, %48 : vector<1x256xf32>
    %c240_i32 = arith.constant 240 : i32
    %50 = tpu.dynamic_rotate %49 by %c240_i32 dim 1 : vector<1x256xf32>, i32 -> vector<1x256xf32>
    %51 = arith.mulf %50, %7 : vector<1x256xf32>
    %52 = arith.addf %38, %51 : vector<1x256xf32>
    %cst_13 = arith.constant 0.000000e+00 : f32
    %53 = vector.broadcast %cst_13 : f32 to vector<1x256xf32>
    %54 = arith.maximumf %52, %53 : vector<1x256xf32>
    %c0_14 = arith.constant 0 : index
    %55 = memref.load %arg4[%c0_14] : memref<1xf32, #tpu.memory_space<smem>>
    %56 = vector.broadcast %55 : f32 to vector<1x256xf32>
    %57 = arith.mulf %54, %56 : vector<1x256xf32>
    %cst_15 = arith.constant 5.000000e-01 : f32
    %58 = vector.broadcast %cst_15 : f32 to vector<1x256xf32>
    %59 = arith.mulf %57, %58 : vector<1x256xf32>
    %60 = math.tanh %59 : vector<1x256xf32>
    %cst_16 = arith.constant 5.000000e-01 : f32
    %61 = vector.broadcast %cst_16 : f32 to vector<1x256xf32>
    %62 = arith.mulf %60, %61 : vector<1x256xf32>
    %cst_17 = arith.constant 5.000000e-01 : f32
    %63 = vector.broadcast %cst_17 : f32 to vector<1x256xf32>
    %64 = arith.addf %62, %63 : vector<1x256xf32>
    %65 = vector.shape_cast %64 : vector<1x256xf32> to vector<1x1x256xf32>
    %66 = vector.broadcast %65 : vector<1x1x256xf32> to vector<1x4x256xf32>
    %67 = arith.addf %0, %66 : vector<1x4x256xf32>
    %c0_18 = arith.constant 0 : index
    %c0_19 = arith.constant 0 : index
    %68 = vector.load %arg5[%c0_18, %c0_19] : memref<8x4xf32, #tpu.memory_space<vmem>>, vector<8x4xf32>
    %69 = vector.extract_strided_slice %68 {offsets = [0, 0], sizes = [8, 1], strides = [1, 1]} : vector<8x4xf32> to vector<8x1xf32>
    %70 = vector.shape_cast %69 : vector<8x1xf32> to vector<1x8x1xf32>
    %71 = vector.extract_strided_slice %67 {offsets = [0, 0, 0], sizes = [1, 1, 256], strides = [1, 1, 1]} : vector<1x4x256xf32> to vector<1x1x256xf32>
    %72 = vector.broadcast %70 : vector<1x8x1xf32> to vector<1x8x256xf32>
    %73 = vector.broadcast %71 : vector<1x1x256xf32> to vector<1x8x256xf32>
    %74 = arith.mulf %72, %73 : vector<1x8x256xf32>
    %75 = vector.extract_strided_slice %68 {offsets = [0, 1], sizes = [8, 1], strides = [1, 1]} : vector<8x4xf32> to vector<8x1xf32>
    %76 = vector.shape_cast %75 : vector<8x1xf32> to vector<1x8x1xf32>
    %77 = vector.extract_strided_slice %67 {offsets = [0, 1, 0], sizes = [1, 1, 256], strides = [1, 1, 1]} : vector<1x4x256xf32> to vector<1x1x256xf32>
    %78 = vector.broadcast %76 : vector<1x8x1xf32> to vector<1x8x256xf32>
    %79 = vector.broadcast %77 : vector<1x1x256xf32> to vector<1x8x256xf32>
    %80 = arith.mulf %78, %79 : vector<1x8x256xf32>
    %81 = arith.addf %74, %80 : vector<1x8x256xf32>
    %82 = vector.extract_strided_slice %68 {offsets = [0, 2], sizes = [8, 1], strides = [1, 1]} : vector<8x4xf32> to vector<8x1xf32>
    %83 = vector.shape_cast %82 : vector<8x1xf32> to vector<1x8x1xf32>
    %84 = vector.extract_strided_slice %67 {offsets = [0, 2, 0], sizes = [1, 1, 256], strides = [1, 1, 1]} : vector<1x4x256xf32> to vector<1x1x256xf32>
    %85 = vector.broadcast %83 : vector<1x8x1xf32> to vector<1x8x256xf32>
    %86 = vector.broadcast %84 : vector<1x1x256xf32> to vector<1x8x256xf32>
    %87 = arith.mulf %85, %86 : vector<1x8x256xf32>
    %88 = arith.addf %81, %87 : vector<1x8x256xf32>
    %89 = vector.extract_strided_slice %68 {offsets = [0, 3], sizes = [8, 1], strides = [1, 1]} : vector<8x4xf32> to vector<8x1xf32>
    %90 = vector.shape_cast %89 : vector<8x1xf32> to vector<1x8x1xf32>
    %91 = vector.extract_strided_slice %67 {offsets = [0, 3, 0], sizes = [1, 1, 256], strides = [1, 1, 1]} : vector<1x4x256xf32> to vector<1x1x256xf32>
    %92 = vector.broadcast %90 : vector<1x8x1xf32> to vector<1x8x256xf32>
    %93 = vector.broadcast %91 : vector<1x1x256xf32> to vector<1x8x256xf32>
    %94 = arith.mulf %92, %93 : vector<1x8x256xf32>
    %95 = arith.addf %88, %94 : vector<1x8x256xf32>
    %cst_20 = arith.constant 5.000000e-01 : f32
    %96 = vector.broadcast %cst_20 : f32 to vector<1x8x256xf32>
    %97 = arith.mulf %95, %96 : vector<1x8x256xf32>
    %98 = math.tanh %97 : vector<1x8x256xf32>
    %cst_21 = arith.constant 5.000000e-01 : f32
    %99 = vector.broadcast %cst_21 : f32 to vector<1x8x256xf32>
    %100 = arith.mulf %98, %99 : vector<1x8x256xf32>
    %cst_22 = arith.constant 5.000000e-01 : f32
    %101 = vector.broadcast %cst_22 : f32 to vector<1x8x256xf32>
    %102 = arith.addf %100, %101 : vector<1x8x256xf32>
    %c0_23 = arith.constant 0 : index
    %c0_24 = arith.constant 0 : index
    %c0_25 = arith.constant 0 : index
    %103 = vector.load %arg6[%c0_23, %c0_24, %c0_25] : memref<1x8x256xf32, #tpu.memory_space<vmem>>, vector<1x8x256xf32>
    tpu.vector_store %arg6[%c0_23, %c0_24, %c0_25], %102 {strides = array<i32>} : memref<1x8x256xf32, #tpu.memory_space<vmem>>, vector<1x8x256xf32>,
    return
  }
  func.func @transform_0(%arg0: i32) -> (i32, i32, i32) {
    %c0_i32 = arith.constant 0 : i32
    %c0_i32_0 = arith.constant 0 : i32
    %c0_i32_1 = arith.constant 0 : i32
    return %arg0, %c0_i32, %c0_i32_0 : i32, i32, i32
  }
  func.func @transform_1(%arg0: i32) -> (i32, i32) {
    %c0_i32 = arith.constant 0 : i32
    %c0_i32_0 = arith.constant 0 : i32
    %c0_i32_1 = arith.constant 0 : i32
    return %c0_i32, %c0_i32_0 : i32, i32
  }
  func.func @transform_2(%arg0: i32) -> i32 {
    %c0_i32 = arith.constant 0 : i32
    %c0_i32_0 = arith.constant 0 : i32
    return %c0_i32 : i32
  }
  func.func @transform_3(%arg0: i32) -> i32 {
    %c0_i32 = arith.constant 0 : i32
    %c0_i32_0 = arith.constant 0 : i32
    return %c0_i32 : i32
  }
  func.func @transform_4(%arg0: i32) -> (i32, i32) {
    %c0_i32 = arith.constant 0 : i32
    %c0_i32_0 = arith.constant 0 : i32
    %c0_i32_1 = arith.constant 0 : i32
    return %c0_i32, %c0_i32_0 : i32, i32
  }
  func.func @transform_5(%arg0: i32) -> (i32, i32, i32) {
    %c0_i32 = arith.constant 0 : i32
    %c0_i32_0 = arith.constant 0 : i32
    %c0_i32_1 = arith.constant 0 : i32
    return %arg0, %c0_i32, %c0_i32_0 : i32, i32, i32
  }
}

</mosaic_0001>

<bundles_post_ra>
// kernel: tpu_custom_call.1
= control target key start
LH: loop header
LB: loop body
LE: loop exit
PB: predicated region body
PF: predicated region fallthrough
CT: control target
= control target key end

     0   :  { %s1209_s0 = inlined_call_operand.hbm [shape: f32[2,4,256], index: 0, kind: input, shape index: {}]   ;;  %s1210_s1 = inlined_call_operand.vmem [shape: f32[4,256], index: 1, kind: input, shape index: {}]   ;;  %s1211_s2 = inlined_call_operand.vmem [shape: f32[9], index: 2, kind: input, shape index: {}]   ;;  %s1212_s3 = inlined_call_operand.<no memory space> [shape: f32[1], index: 3, kind: input, shape index: {}]   ;;  %s1213_s4 = inlined_call_operand.vmem [shape: f32[8,4], index: 4, kind: input, shape index: {}]   ;;  %s1214_s5 = inlined_call_operand.hbm [shape: f32[2,8,256], index: 5, kind: output, shape index: {}]  }
   0x1   :  { %10 = sst [smem:[#allocation2]] %s1212_s3 }
   0x2   :  { %11 = vsyncpa [#allocation4], 0 }
   0x3   :  { %13 = vsyncpa [#allocation4 + $0x1], 0 }
   0x4   :  { %14 = vsyncpa [#allocation6], 0 }
   0x5   :  { %15 = vsyncpa [#allocation5], 0 }
   0x6   :  { %17 = vsyncpa [#allocation5 + $0x1], 0  ;;  %s927_s20 = smov 0   ;;  %s929_s21 = smov 0  }
   0x7   :  { %s931_s22 = smov 0   ;;  %s933_s23 = smov 0  }
   0x8 LB: > { %s948_s3 = sadd.s32 4294967295, %s881_s23   ;;  %s659_s24 = sadd.s32 4294967294, %s881_s23   ;;  %s881_s23 = sphi %s933_s23, %s1235_s23   ;;  %s877_s22 = sphi %s931_s22, %s1234_s22   ;;  %s873_s21 = sphi %s929_s21, %s1233_s21   ;;  %s869_s20 = sphi %s927_s20, %s1232_s20  }
   0x9   : > { %p43_p0 = scmp.ne.s32.totalorder %s873_s21, %s869_s20  ;;  %p1215_p1 = scmp.eq.s32.totalorder %s948_s3, 0 }
   0xa   : > { %p157_p3 = scmp.eq.s32.totalorder %s659_s24, 1  ;;  %p660_p5 = scmp.ge.s32.totalorder %s881_s23, 1 }
   0xb   : > { %p957_p4 = por %p1215_p1, %p43_p0  ;;  %p164_p7 = scmp.lt.s32.totalorder %s881_s23, 3 }
   0xc   : > { %p962_p6 = por %p157_p3, %p43_p0  ;;  %s180_s29 = sshll.u32 %s1211_s2, 4  ;;  %s181_s29 = int_to_ptr.vmem [resolvable:$true] %s180_s29 }
   0xd   : > { %s1218_s25 = scalar_select %p957_p4, 1, 0 }
   0xe   : > { %s1219_s26 = scalar_select %p962_p6, 1, 0 }
   0xf   : > { %p970_p8 = pnand %p660_p5, %p164_p7  ;;  %s978_s6 = sadd.s32 1, %s881_s23  }
  0x10   : > { %s27_s8 = ssub.s32 %s881_s23, %s978_s6  ;;  %s30_s10 = sadd.s32 1, %s877_s22 }
  0x11   : > { %p696_p10 = pneg %p970_p8  ;;  %p988_p12 = scmp.eq.s32.totalorder %s27_s8, 0 }
  0x12   : > { %p37_p13 = scmp.ne.s32.totalorder %s877_s22, %s873_s21  ;;  %s766_s11 = scalar_lea.vmem %s181_s29, 16 }
  0x13   : > { %p982_p11 = pnand %p696_p10, %p1215_p1  ;;  %p767_p0 = scmp.ne.s32.totalorder %s181_s29, %s766_s11 }
  0x14   : > { %p774_p9 = scmp.lt.s32.totalorder %s181_s29, %s181_s29  ;;  %p775_p2 = scmp.lt.s32.totalorder %s766_s11, %s766_s11 }
  0x15   : > { %p768_p3 = pneg %p982_p11 }
  0x16   : > { %p776_p10 = por %p775_p2, %p774_p9 }
  0x17   : > { %p769_p5 = pnand %p768_p3, %p767_p0 }
  0x19   : > { %p770_p7 = pneg %p769_p5 }
  0x1b   : > { %p777_p1 = pnand %p776_p10, %p770_p7 }
  0x1d   : > { %780 = shalt.err (!%p777_p1)
}
  0x1e   : > { %s883_s12 = smov [#allocation7]   ;;  %p38_p2 = scmp.eq.s32.totalorder %s881_s23, 0 }
  0x1f   : > { %699 = dma.vmem_to_smem (!%p982_p11), %s181_s29, 16, %s883_s12, [#allocation6]  }
  0x20   : > { %s1002_s13 = scalar_select %p988_p12, %s877_s22, %s30_s10  }
  0x21   : > { %p1223_p1 = scmp.eq.s32.totalorder %s948_s3, 1  ;;  %p709_p0 = scmp.lt.s32.totalorder %s881_s23, 2 }
  0x22   : > { %s197_s15 = sand.u32 1, %s877_s22   ;;  %p39_p3 = por %p38_p2, %p37_p13 }
  0x23   : > { %p1010_p9 = por %p1223_p1, %p37_p13  ;;  %s663_s16 = sshll.u32 %s197_s15, 3 }
  0x24   : > { %s686_s17 = sshll.u32 %s881_s23, 7  ;;  %s201_s27 = scalar_lea.vmem [#allocation3], %s663_s16 }
  0x25   : > { %s1224_s14 = scalar_select %p1010_p9, 1, 0 }
  0x26   : > { %s1023_s24 = scalar_lea.hbm %s1209_s0, %s686_s17  ;;  %s209_s28 = sshll.u32 %s201_s27, 4  ;;  %s1029_s28 = int_to_ptr.vmem [resolvable:$true] %s209_s28 }
  0x27   : > { %p1025_p11 = pnand %p709_p0, %p39_p3  ;;  %s198_s7 = scalar_lea.sflag [#allocation4], %s197_s15 }
  0x28   : > { %s781_s8 = scalar_lea.hbm %s1023_s24, 128  ;;  %s786_s11 = scalar_lea.hbm %s1209_s0, 256 }
  0x29   : > { %p782_p12 = scmp.ne.s32.totalorder %s1023_s24, %s781_s8  ;;  %p783_p13 = pneg %p1025_p11 }
  0x2a   : > { %p787_p10 = scmp.lt.u32.totalorder %s1023_s24, %s1209_s0  ;;  %p788_p2 = scmp.lt.u32.totalorder %s786_s11, %s781_s8 }
  0x2b   : > { %p784_p5 = pnand %p783_p13, %p782_p12  ;;  %p790_p0 = scmp.lt.u32.totalorder %s781_s8, %s1023_s24 }
  0x2c   : > { %p789_p1 = por %p788_p2, %p787_p10 }
  0x2d   : > { %p785_p7 = pneg %p784_p5 }
  0x2e   : > { %p791_p3 = por %p790_p0, %p789_p1 }
  0x30   : > { %p792_p6 = pnand %p791_p3, %p785_p7 }
  0x32   : > { %795 = shalt.err (!%p792_p6)
}
  0x33   : > { %s796_s15 = scalar_lea.vmem %s1029_s28, 128  ;;  %s884_s17 = smov [#allocation3]  }
  0x34   : > { %p797_p12 = scmp.ne.s32.totalorder %s1029_s28, %s796_s15  ;;  %s801_s18 = sshll.u32 %s884_s17, 4  ;;  %s802_s18 = int_to_ptr.vmem [resolvable:$false] %s801_s18 }
  0x35   : > { %s803_s19 = scalar_lea.vmem %s802_s18, 256  ;;  %p804_p4 = scmp.lt.s32.totalorder %s1029_s28, %s802_s18 }
  0x36   : > { %p799_p5 = pnand %p797_p12, %p783_p13  ;;  %p805_p10 = scmp.lt.s32.totalorder %s803_s19, %s796_s15 }
  0x38   : > { %p800_p9 = pneg %p799_p5  ;;  %p806_p2 = por %p805_p10, %p804_p4 }
  0x3a   : > { %p807_p1 = pnand %p806_p2, %p800_p9 }
  0x3c   : > { %810 = shalt.err (!%p807_p1)
}
  0x3d   : > { %703 = dma.hbm_to_vmem [thread:$0]  (!%p1025_p11), %s1023_s24, 128, %s1029_s28, %s198_s7  }
  0x3e   : > { %218 = sbr.rel (%p970_p8) target bundleno = 416 (0x1a0), region = 40  ;;  %s1059_s27 = sand.u32 (!%p970_p8), 1, %s873_s21  }
  0x3f   : > { %s667_s8 = sshll.u32 (!%p970_p8), %s1059_s27, 3  ;;  %s221_s9 = scalar_lea.sflag (!%p970_p8), [#allocation4], %s1059_s27 }
  0x40   : > { %s224_s10 = scalar_lea.vmem (!%p970_p8), [#allocation3], %s667_s8  ;;  %p1226_p4 = scmp.ne.s32.totalorder (!%p970_p8), %s1218_s25, 0 }
  0x45   : > { %856 = dma.done.wait (%p1226_p4), %s221_s9, 128  }
  0x46   : > { %858 = vsyncadd (%p1226_p4), %s221_s9, 4294967168  ;;  %p1227_p6 = scmp.eq.s32.totalorder %s948_s3, 0 }
  0x48   : > { %860 = dma.done.wait (%p1227_p6), [#allocation6], 16   ;;  %p1228_p9 = pmov %p1227_p6 }
  0x4a   : > { %862 = vsyncadd (%p1228_p9), [#allocation6], 4294967280 }
  0x4b   : > { %233 = sfence }
  0x4c   : > { %v1071_v0 = vld [vmem:[%s224_s10] sm:$0xff]  ;;  %vm260_vm0 = vcmask 1043456   ;;  %s885_s25 = smov 127   ;;  %s886_s30 = smov 1   ;;  %v887_v18 = vmov 1   ;;  %v888_v19 = vmov 0   ;;  %v288_v20 = vlaneseq }
  0x4d   : > { %v261_v1 = vsel %vm260_vm0, %v1071_v0, 0.0  ;;  %v258_v2 = vcombine.high %v1071_v0, %v1071_v0  ;;  %754 = vset.pattern.permute.xlu1 %v887_v18  ;;  %753 = vset.pattern.permute.xlu0 %v888_v19  ;;  %s673_s24 = sld [smem:[#allocation7 + $0x1]]  ;;  %s1078_s28 = sld [smem:[#allocation7 + $0x5]]  ;;  %v670_v22 = vld [vmem:[%s1210_s1 + $0x1] ss:$4 sm:$0x3] }
  0x4e   : > { %v262_v3 = vrot.slane %v261_v1, 4  ;;  %v1076_v21 = vshrl.u32 %v288_v20, 7  ;;  %s1080_s29 = sld [smem:[#allocation7]]  ;;  %s1082_s7 = sld [smem:[#allocation7 + $0x3]]  ;;  %v1093_v23 = vand.u32 127, %v288_v20  ;;  %v447_v19 = vld [vmem:[%s1213_s4] sm:$0xff] }
  0x4f   : > { %v268_v4 = vsel %vm260_vm0, %v258_v2, 0.0  ;;  %s1084_s11 = sld [smem:[#allocation7 + $0x6]]  ;;  %s1086_s12 = sld [smem:[#allocation7 + $0x7]]  ;;  %v277_v26 = vld [vmem:[%s1210_s1] ss:$4 sm:$0x3] }
  0x50   : > { %v263_v5 = vadd.f32 %v262_v3, %v261_v1  ;;  %v269_v6 = vrot.slane %v268_v4, 4  ;;  %s1088_s16 = sld [smem:[#allocation7 + $0x4]]  ;;  %v1096_v24 = vsub.s32 0, %v1076_v21  ;;  %v1099_v25 = vsub.s32 1, %v1076_v21  ;;  %s1104_s8 = sld [smem:[#allocation7 + $0x2]] }
  0x51   : > { %s1106_s9 = sld [smem:[#allocation7 + $0x8]]  ;;  %vm310_vm1 = vcmp.lt.s32.totalorder %v1093_v23, 127  ;;  %vm290_vm2 = vcmp.lt.s32.totalorder %v1093_v23, 1  ;;  %s889_s10 = smov 16   ;;  %v891_v20 = vmov 3   ;;  %vm346_vm3 = vcmp.lt.s32.totalorder %v1093_v23, 16 }
  0x52   : > { %v264_v7 = vrot.slane %v263_v5, 2  ;;  %v270_v8 = vadd.f32 %v269_v6, %v268_v4  ;;  %v317_v29 = vrot.slane %v670_v22, %v1096_v24  ;;  %v321_v31 = vrot.slane %v670_v22, %v1099_v25  ;;  %s687_s15 = sshll.u32 %s948_s3, 8  ;;  %p1229_p11 = scmp.ne.s32.totalorder %s1224_s14, 0 }
  0x53   : > { %v331_v30 = vstv %s673_s24  ;;  %v297_v32 = vrot.slane %v277_v26, %v1096_v24  ;;  %v301_v33 = vrot.slane %v277_v26, %v1099_v25  ;;  %v375_v34 = vstv %s1078_s28  ;;  %v671_v26 = vld [vmem:[%s1210_s1 + $0x2] ss:$4 sm:$0x3]  ;;  %s893_s3 = smov [#allocation8]  }
  0x54   : > { %v265_v9 = vadd.f32 %v264_v7, %v263_v5  ;;  %v271_v10 = vrot.slane %v270_v8, 2  ;;  %v327_v35 = vstv %s1080_s29  ;;  %v365_v36 = vstv %s1082_s7 }
  0x55   : > { %v383_v37 = vstv %s1084_s11  ;;  %v387_v42 = vstv %s1086_s12  ;;  %v892_v22 = vmov 2   ;;  %vm402_vm4 = vcmp.lt.s32.totalorder %v1093_v23, 112  ;;  %s422_s12 = sld [smem:[#allocation2]] }
  0x56   : > { %v266_v11 = vrot.slane %v265_v9, 1  ;;  %v272_v12 = vadd.f32 %v271_v10, %v270_v8  ;;  %v369_v43 = vstv %s1088_s16  ;;  %v337_v52 = vstv %s1104_s8  ;;  %s669_s16 = sshll.u32 %s1059_s27, 4 }
  0x57   : > { %v393_v54 = vstv %s1106_s9  ;;  %s255_s17 = scalar_lea.vmem [#allocation8], %s669_s16  ;;  %s1165_s9 = scalar_lea.hbm %s1214_s5, %s687_s15 }
  0x58   : > { %v267_v13 = vadd.f32 %v266_v11, %v265_v9  ;;  %v273_v14 = vrot.slane %v272_v12, 1  ;;  %s577_s18 = sshll.u32 %s255_s17, 4  ;;  %s1167_s18 = int_to_ptr.vmem [resolvable:$true] %s577_s18 }
  0x5a   : > { %v275_v15 = vmul.f32 0.25, %v267_v13  ;;  %v274_v16 = vadd.f32 %v273_v14, %v272_v12 }
  0x5c   : > { %306 = vrot.lane.b32.xlu1 %v275_v15, %s885_s25  ;;  %284 = vrot.lane.b32.xlu0 %v275_v15, %s886_s30  ;;  %v276_v17 = vmul.f32 0.25, %v274_v16  ;;  %v332_v40 = vmul.f32 %v331_v30, %v275_v15  ;;  %v388_v53 = vmul.f32 %v387_v42, %v275_v15  ;;  %v370_v58 = vmul.f32 %v369_v43, %v275_v15 }
  0x5e   : > { %v333_v41 = vmul.f32 %v331_v30, %v276_v17  ;;  %v389_v55 = vmul.f32 %v387_v42, %v276_v17  ;;  %v371_v59 = vmul.f32 %v369_v43, %v276_v17 }
  0x60   : > { %308 = vrot.lane.b32.xlu1 %v276_v17, %s885_s25  ;;  %286 = vrot.lane.b32.xlu0 %v276_v17, %s886_s30  ;;  %s890_s25 = smov 112   ;;  %s815_s30 = sshll.u32 %s893_s3, 4  ;;  %s816_s30 = int_to_ptr.vmem [resolvable:$false] %s815_s30 }
  0x61   : > { %s817_s24 = scalar_lea.vmem %s816_s30, 512  ;;  %p818_p0 = scmp.lt.s32.totalorder %s1167_s18, %s816_s30 }
  0xce   : > { %v307_v27 = vpop.permute.xlu1 %306  ;;  %v285_v28 = vpop.permute.xlu0 %284 }
  0xd2   : > { %v309_v38 = vpop.permute.xlu1 %308  ;;  %v287_v39 = vpop.permute.xlu0 %286 }
  0xd3   : > { %v311_v44 = vsel %vm310_vm1, %v307_v27, %v309_v38  ;;  %v312_v45 = vsel %vm310_vm1, %v309_v38, %v307_v27  ;;  %v291_v46 = vsel %vm290_vm2, %v285_v28, %v287_v39  ;;  %v292_v47 = vsel %vm290_vm2, %v287_v39, %v285_v28 }
  0xd4   : > { %v324_v48 = vmul.f32 %v317_v29, %v311_v44  ;;  %v325_v49 = vmul.f32 %v321_v31, %v312_v45  ;;  %v304_v50 = vmul.f32 %v297_v32, %v292_v47  ;;  %v305_v51 = vmul.f32 %v301_v33, %v291_v46  ;;  %v672_v29 = vld [vmem:[%s1210_s1 + $0x3] ss:$4 sm:$0x3] }
  0xd5   : > { %v353_v27 = vrot.slane %v671_v26, %v1096_v24  ;;  %v357_v28 = vrot.slane %v671_v26, %v1099_v25 }
  0xd6   : > { %v328_v56 = vmul.f32 %v327_v35, %v304_v50  ;;  %v329_v57 = vmul.f32 %v327_v35, %v305_v51  ;;  %v366_v60 = vmul.f32 %v365_v36, %v304_v50  ;;  %v367_v61 = vmul.f32 %v365_v36, %v305_v51 }
  0xd7   : > { %v384_v62 = vmul.f32 %v383_v37, %v304_v50  ;;  %v385_v63 = vmul.f32 %v383_v37, %v305_v51  ;;  %v338_v2 = vmul.f32 %v337_v52, %v324_v48  ;;  %v339_v4 = vmul.f32 %v337_v52, %v325_v49 }
  0xd8   : > { %v334_v1 = vadd.f32 %v332_v40, %v328_v56  ;;  %v335_v3 = vadd.f32 %v333_v41, %v329_v57  ;;  %v376_v5 = vmul.f32 %v375_v34, %v324_v48  ;;  %v377_v6 = vmul.f32 %v375_v34, %v325_v49 }
  0xd9   : > { %v390_v7 = vadd.f32 %v388_v53, %v384_v62  ;;  %v391_v8 = vadd.f32 %v389_v55, %v385_v63  ;;  %v372_v11 = vadd.f32 %v370_v58, %v366_v60  ;;  %v373_v12 = vadd.f32 %v371_v59, %v367_v61 }
  0xda   : > { %v340_v9 = vadd.f32 %v338_v2, %v334_v1  ;;  %v341_v10 = vadd.f32 %v339_v4, %v335_v3  ;;  %v394_v13 = vmul.f32 %v393_v54, %v324_v48  ;;  %v395_v14 = vmul.f32 %v393_v54, %v325_v49 }
  0xdb   : > { %v378_v15 = vadd.f32 %v376_v5, %v372_v11  ;;  %v379_v16 = vadd.f32 %v377_v6, %v373_v12  ;;  %v409_v36 = vrot.slane %v672_v29, %v1096_v24  ;;  %v413_v37 = vrot.slane %v672_v29, %v1099_v25 }
  0xdc   : > { %342 = vrot.lane.b32.xlu0 %v340_v9, %s889_s10  ;;  %344 = vrot.lane.b32.xlu1 %v341_v10, %s889_s10  ;;  %v396_v17 = vadd.f32 %v394_v13, %v390_v7  ;;  %v397_v18 = vadd.f32 %v395_v14, %v391_v8  ;;  %v423_v48 = vstv %s422_s12  ;;  %v460_v63 = vsub.s32 4, %v1076_v21  ;;  %s563_s10 = scalar_lea.sflag [#allocation5], %s1059_s27 }
  0xdd   : > { %v484_v1 = vsub.s32 5, %v1076_v21  ;;  %v532_v3 = vsub.s32 3, %v1076_v21  ;;  %v536_v4 = vsub.s32 7, %v1076_v21  ;;  %v506_v5 = vsub.s32 2, %v1076_v21 }
  0xde   : > { %v510_v6 = vsub.s32 6, %v1076_v21 }
  0xe0   : > { %398 = vrot.lane.b32.xlu0 %v396_v17, %s890_s25  ;;  %400 = vrot.lane.b32.xlu1 %v397_v18, %s890_s25  ;;  %s811_s25 = scalar_lea.vmem %s1167_s18, 256 }
  0xe1   : > { %p812_p8 = scmp.ne.s32.totalorder %s1167_s18, %s811_s25  ;;  %p819_p3 = scmp.lt.s32.totalorder %s817_s24, %s811_s25 }
  0xe3   : > { %p813_p13 = pnand %p812_p8, %p1229_p11  ;;  %p820_p12 = por %p819_p3, %p818_p0 }
  0xe4   : > { %450 = vperm.xlu0 %753, %v447_v19   ;;  %475 = vperm.xlu1 %754, %v447_v19  }
  0xe5   : > { %p814_p7 = pneg %p813_p13 }
  0xe7   : > { %p821_p5 = pnand %p820_p12, %p814_p7 }
  0xe8   : > { %756 = vset.pattern.permute.xlu0 %v891_v20  ;;  %755 = vset.pattern.permute.xlu1 %v892_v22 }
  0xe9   : > { %527 = vperm.xlu0 %756, %v447_v19   ;;  %501 = vperm.xlu1 %755, %v447_v19  }
 0x14e   : > { %v343_v30 = vpop.permute.xlu0 %342  ;;  %v345_v31 = vpop.permute.xlu1 %344 }
 0x14f   : > { %v347_v32 = vsel %vm346_vm3, %v343_v30, %v345_v31  ;;  %v348_v33 = vsel %vm346_vm3, %v345_v31, %v343_v30 }
 0x150   : > { %v360_v34 = vmul.f32 %v353_v27, %v348_v33  ;;  %v361_v35 = vmul.f32 %v357_v28, %v347_v32 }
 0x152   : > { %v399_v38 = vpop.permute.xlu0 %398  ;;  %v401_v39 = vpop.permute.xlu1 %400  ;;  %v380_v42 = vadd.f32 %v378_v15, %v360_v34  ;;  %v381_v43 = vadd.f32 %v379_v16, %v361_v35 }
 0x153   : > { %v403_v40 = vsel %vm402_vm4, %v399_v38, %v401_v39  ;;  %v404_v41 = vsel %vm402_vm4, %v401_v39, %v399_v38 }
 0x154   : > { %v416_v44 = vmul.f32 %v409_v36, %v403_v40  ;;  %v417_v45 = vmul.f32 %v413_v37, %v404_v41 }
 0x156   : > { %v418_v46 = vadd.f32 %v416_v44, %v380_v42  ;;  %v419_v47 = vadd.f32 %v417_v45, %v381_v43 }
 0x158   : > { %v420_v49 = vmax.f32 %v418_v46, 0.0  ;;  %v421_v23 = vmax.f32 %v419_v47, 0.0 }
 0x15a   : > { %v424_v50 = vmul.f32 %v423_v48, %v420_v49  ;;  %v425_v51 = vmul.f32 %v423_v48, %v421_v23 }
 0x15c   : > { %v426_v52 = vmul.f32 0.5, %v424_v50  ;;  %v427_v53 = vmul.f32 0.5, %v425_v51 }
 0x15e   : > { %758 = vtanh.f32 %v426_v52 }
 0x15f   : > { %760 = vtanh.f32 %v427_v53 }
 0x163   : > { %v476_v2 = vpop.permute.xlu1 %475  ;;  %v451_v8 = vpop.permute.xlu0 %450 }
 0x168   : > { %v759_v54 = vpop.eup %758  ;;  %v502_v27 = vpop.permute.xlu1 %501 }
 0x169   : > { %v761_v55 = vpop.eup %760  ;;  %v430_v56 = vmul.f32 0.5, %v759_v54  ;;  %v528_v32 = vpop.permute.xlu0 %527 }
 0x16a   : > { %v431_v57 = vmul.f32 0.5, %v761_v55 }
 0x16b   : > { %v432_v58 = vadd.f32 0.5, %v430_v56 }
 0x16c   : > { %v433_v59 = vadd.f32 0.5, %v431_v57 }
 0x16d   : > { %v437_v60 = vrot.slane %v432_v58, %v1096_v24 }
 0x16e   : > { %v441_v61 = vrot.slane %v433_v59, %v1096_v24 }
 0x170   : > { %v444_v62 = vcombine.low %v437_v60, %v441_v61 }
 0x172   : > { %v446_v7 = vadd.f32 %v444_v62, %v1071_v0 }
 0x174   : > { %v457_v9 = vrot.slane %v446_v7, %v1096_v24  ;;  %v461_v10 = vrot.slane %v446_v7, %v460_v63  ;;  %v481_v11 = vrot.slane %v446_v7, %v1099_v25  ;;  %v485_v12 = vrot.slane %v446_v7, %v484_v1 }
 0x175   : > { %v533_v13 = vrot.slane %v446_v7, %v532_v3  ;;  %v537_v14 = vrot.slane %v446_v7, %v536_v4  ;;  %v507_v15 = vrot.slane %v446_v7, %v506_v5  ;;  %v511_v16 = vrot.slane %v446_v7, %v510_v6 }
 0x176   : > { %v467_v17 = vrot.slane %v457_v9, %v1096_v24  ;;  %v471_v18 = vrot.slane %v461_v10, %v1096_v24  ;;  %v491_v19 = vrot.slane %v481_v11, %v1099_v25  ;;  %v495_v21 = vrot.slane %v485_v12, %v1099_v25 }
 0x177   : > { %v543_v0 = vrot.slane %v533_v13, %v532_v3  ;;  %v547_v20 = vrot.slane %v537_v14, %v532_v3  ;;  %v517_v22 = vrot.slane %v507_v15, %v506_v5  ;;  %v521_v26 = vrot.slane %v511_v16, %v506_v5 }
 0x178   : > { %v472_v28 = vmul.f32 %v467_v17, %v451_v8  ;;  %v473_v29 = vmul.f32 %v471_v18, %v451_v8  ;;  %v496_v30 = vmul.f32 %v491_v19, %v476_v2  ;;  %v497_v31 = vmul.f32 %v495_v21, %v476_v2 }
 0x179   : > { %v522_v35 = vmul.f32 %v517_v22, %v502_v27  ;;  %v523_v24 = vmul.f32 %v521_v26, %v502_v27  ;;  %v548_v36 = vmul.f32 %v543_v0, %v528_v32  ;;  %v549_v37 = vmul.f32 %v547_v20, %v528_v32 }
 0x17a   : > { %v498_v33 = vadd.f32 %v496_v30, %v472_v28  ;;  %v499_v34 = vadd.f32 %v497_v31, %v473_v29 }
 0x17c   : > { %v524_v38 = vadd.f32 %v522_v35, %v498_v33  ;;  %v525_v25 = vadd.f32 %v523_v24, %v499_v34 }
 0x17e   : > { %v550_v39 = vadd.f32 %v548_v36, %v524_v38  ;;  %v551_v40 = vadd.f32 %v549_v37, %v525_v25 }
 0x180   : > { %v552_v41 = vmul.f32 0.5, %v550_v39  ;;  %v553_v42 = vmul.f32 0.5, %v551_v40 }
 0x182   : > { %762 = vtanh.f32 %v552_v41 }
 0x183   : > { %764 = vtanh.f32 %v553_v42 }
 0x18c   : > { %v763_v43 = vpop.eup %762 }
 0x18d   : > { %v765_v44 = vpop.eup %764  ;;  %v556_v45 = vmul.f32 0.5, %v763_v43 }
 0x18e   : > { %v557_v46 = vmul.f32 0.5, %v765_v44 }
 0x18f   : > { %v558_v47 = vadd.f32 0.5, %v556_v45 }
 0x190   : > { %v559_v48 = vadd.f32 0.5, %v557_v46 }
 0x191   : > { %560 = vst [vmem:[%s255_s17] sm:$0xff] %v558_v47 }
 0x192   : > { %561 = vst [vmem:[%s255_s17 + $0x8] sm:$0xff] %v559_v48 }
 0x193   : > { %824 = shalt.err (!%p821_p5)
}
 0x194   : > { %s825_s27 = scalar_lea.hbm %s1165_s9, 256  ;;  %s829_s7 = scalar_lea.hbm %s1214_s5, 512 }
 0x195   : > { %p826_p10 = scmp.ne.s32.totalorder %s1165_s9, %s825_s27  ;;  %p830_p4 = scmp.lt.u32.totalorder %s1165_s9, %s1214_s5 }
 0x196   : > { %p831_p6 = scmp.lt.u32.totalorder %s829_s7, %s825_s27  ;;  %p833_p8 = scmp.lt.u32.totalorder %s825_s27, %s1165_s9 }
 0x197   : > { %p827_p2 = pnand %p826_p10, %p1229_p11 }
 0x198   : > { %p832_p9 = por %p831_p6, %p830_p4 }
 0x199   : > { %p828_p1 = pneg %p827_p2 }
 0x19a   : > { %p834_p13 = por %p833_p8, %p832_p9 }
 0x19c   : > { %p835_p7 = pnand %p834_p13, %p828_p1 }
 0x19e   : > { %838 = shalt.err (!%p835_p7)
}
 0x19f   : > { %694 = dma.vmem_to_hbm [thread:$0]  (%p1229_p11), %s1167_s18, 256, %s1165_s9, %s563_s10  }
 0x1a0 PF: > { %s589_s16 = sand.u32 1, %s869_s20   ;;  %p1230_p0 = scmp.ne.s32.totalorder %s1219_s26, 0 }
 0x1a1   : > { %p1231_p3 = scmp.ge.s32.totalorder %s881_s23, 2  ;;  %s590_s15 = scalar_lea.sflag [#allocation5], %s589_s16 }
 0x1a3   : > { %p705_p12 = pnand %p1231_p3, %p1230_p0 }
 0x1a5   : > { %864 = dma.done.wait (!%p705_p12), %s590_s15, 256  }
 0x1a6   : > { %866 = vsyncadd (!%p705_p12), %s590_s15, 4294967040  ;;  %p20_p5 = scmp.ge.s32.totalorder %s978_s6, 4   ;;  %s1232_s20 = smov %s873_s21 }
 0x1a7   : > { %s1233_s21 = smov %s877_s22  ;;  %s1234_s22 = smov %s1002_s13 }
 0x1a8   : > { %s1235_s23 = smov %s978_s6  ;;  %22 = sbr.rel (!%p20_p5) target bundleno = 8 (0x8), region = 93 }
 0x1af   :  { %595 = vsyncpa [#allocation4], 1 }
 0x1b0   :  { %597 = vsyncpa [#allocation4 + $0x1], 1 }
 0x1b1   :  { %598 = vsyncpa [#allocation5], 1 }
 0x1b2   :  { %600 = vsyncpa [#allocation5 + $0x1], 1 }
 0x1b3   :  { %601 = vsyncpa [#allocation6], 1 }
 0x1b4   :  { %603 = vsyncpa [#allocation6 + $0x1], 1 }

</bundles_post_ra>
